<compile_context>
chip_gen: v7x
topology: tpu7x:2x2x1
jax: 0.10.0
libtpu: 0.0.40
codegen_flags: <defaults>
</compile_context>

<pallas_src>
import functools

import jax
import jax.numpy as jnp
from jax.experimental import pallas as pl
from jax.experimental.pallas import tpu as pltpu


def _rup(n, m):
    return (n + m - 1) // m * m


def _rup8(n):
    return _rup(n, 8)


def _vae_kernel(x_ref, eps_ref, w_ref, b_ref, out_ref, *, C, H, P):
    # Static row offsets of the packed weight blocks (each padded to 8-row multiples).
    o12 = 0
    ohead = o12 + _rup8(C)
    ohd = ohead + _rup8(H)
    oout = ohd + _rup8(P)

    x = x_ref[...].astype(jnp.bfloat16)     # [TB, C]
    eps = eps_ref[...]                       # [TB, P]  (f32)

    # ---- Encoder: (linear . linear2) folded offline -> one matmul, then ReLU
    h = jnp.dot(x, w_ref[o12:o12 + C, 0:H],
                preferred_element_type=jnp.float32) + b_ref[0:1, 0:H]
    h = jnp.maximum(h, 0.0)

    # ---- Fused mu|sigma head: one [H, 2P] matmul
    y = jnp.dot(h.astype(jnp.bfloat16), w_ref[ohead:ohead + H, 0:2 * P],
                preferred_element_type=jnp.float32) + b_ref[1:2, 0:2 * P]
    # Store mu||sigma immediately (no concat); writeback overlaps decoder matmuls.
    out_ref[:, C:C + 2 * P] = y.astype(out_ref.dtype)

    mu = y[:, :P]
    sigma = y[:, P:]

    # ---- Reparameterization: z = mu + sigma * eps   (f32)
    z = mu + sigma * eps

    # ---- Decoder: (hidden . linear2) folded offline -> one matmul, ReLU, out
    d = jnp.dot(z.astype(jnp.bfloat16), w_ref[ohd:ohd + P, 0:H],
                preferred_element_type=jnp.float32) + b_ref[2:3, 0:H]
    d = jnp.maximum(d, 0.0)
    new_x = jnp.dot(d.astype(jnp.bfloat16), w_ref[oout:oout + H, 0:C],
                    preferred_element_type=jnp.float32) + b_ref[3:4, 0:C]
    out_ref[:, 0:C] = new_x.astype(out_ref.dtype)
    # Columns [C+2P, OUT_W) of the padded output slab stay uninitialized and are
    # dropped by the wrapper slice.


def pack_params(p):
    """Fold consecutive linears (exact algebra) and pack into 2 contiguous buffers."""
    C, H = p["w_lin"].shape
    P = p["w_mu"].shape[1]

    # Encoder: linear -> linear2 (no nonlinearity between) -> fold.
    w12 = p["w_lin"] @ p["w_lin2"]                        # [C, H]
    b12 = p["b_lin"] @ p["w_lin2"] + p["b_lin2"]          # [1, H]
    # Fused mu|sigma head.
    w_head = jnp.concatenate([p["w_mu"], p["w_sig"]], 1)  # [H, 2P]
    b_head = jnp.concatenate([p["b_mu"], p["b_sig"]], 1)  # [1, 2P]
    # Decoder: hidden -> linear2 (no nonlinearity between) -> fold.
    w_hd = p["w_hid"] @ p["w_dec2"]                        # [P, H]
    b_hd = p["b_hid"] @ p["w_dec2"] + p["b_dec2"]          # [1, H]
    w_out, b_out = p["w_out"], p["b_out"]                  # [H, C], [1, C]

    wcols = max(H, 2 * P, C)

    def pad_w(w):  # pad rows to 8-multiple (keeps every block offset sublane-aligned)
        return jnp.pad(w, ((0, _rup8(w.shape[0]) - w.shape[0]),
                           (0, wcols - w.shape[1])))

    def pad_b(b):
        return jnp.pad(b, ((0, 0), (0, wcols - b.shape[1])))

    w_pack = jnp.concatenate([pad_w(w12), pad_w(w_head),
                              pad_w(w_hd), pad_w(w_out)], axis=0)
    b_pack = jnp.concatenate([pad_b(b12), pad_b(b_head),
                              pad_b(b_hd), pad_b(b_out)], axis=0)
    # Weights in bf16 (MXU-native on v6e/v7x); biases stay f32 (added to f32 acc).
    return w_pack.astype(jnp.bfloat16), b_pack


def _choose_tb(B):
    """Batch tile: cap at 1024; ensure >=2 grid steps when B >= 16 (v7x megacore)."""
    cap = 1024
    if B >= 16:
        return min(cap, _rup8(pl.cdiv(B, 2)))
    return _rup8(B)


def vae_forward(x, eps, w_pack, b_pack, *, C, H, P):
    B = x.shape[0]
    TB = _choose_tb(B)
    grid_b = pl.cdiv(B, TB)
    B_pad = grid_b * TB
    if B_pad != B:
        # Pad the ragged last tile in the wrapper; padded rows produce garbage
        # that is sliced off below (each row is independent).
        x = jnp.pad(x, ((0, B_pad - B), (0, 0)))
        eps = jnp.pad(eps, ((0, B_pad - B), (0, 0)))

    OUT_W = _rup(C + 2 * P, 128)  # lane-dense output slab

    kernel = functools.partial(_vae_kernel, C=C, H=H, P=P)

    out = pl.pallas_call(
        kernel,
        out_shape=jax.ShapeDtypeStruct((B_pad, OUT_W), jnp.float32),
        grid=(grid_b,),
        in_specs=[
            pl.BlockSpec((TB, C), lambda i: (i, 0)),        # x
            pl.BlockSpec((TB, P), lambda i: (i, 0)),        # eps
            pl.BlockSpec(w_pack.shape, lambda i: (0, 0)),   # packed weights (resident)
            pl.BlockSpec(b_pack.shape, lambda i: (0, 0)),   # packed biases (resident)
        ],
        out_specs=pl.BlockSpec((TB, OUT_W), lambda i: (i, 0)),
        compiler_params=pltpu.CompilerParams(
            dimension_semantics=("parallel",)),             # shard batch over TCs (v7x)
    )(x, eps, w_pack, b_pack)

    new_x = out[:B, :C]
    mu = out[:B, C:C + P]
    sigma = out[:B, C + P:C + 2 * P]
    return new_x, mu, sigma


def init_params(key, input_channels, hidden_dimensions, probability_dimensions):
    """Deterministic parameter init (uniform like PyTorch Linear default)."""
    def linear(key, fan_in, fan_out):
        k1, k2 = jax.random.split(key)
        bound = 1.0 / (fan_in ** 0.5)
        w = jax.random.uniform(k1, (fan_in, fan_out), jnp.float32, -bound, bound)
        b = jax.random.uniform(k2, (1, fan_out), jnp.float32, -bound, bound)
        return w, b

    keys = jax.random.split(key, 7)
    p = {}
    # encoder
    p["w_lin"], p["b_lin"] = linear(keys[0], input_channels, hidden_dimensions)
    p["w_lin2"], p["b_lin2"] = linear(keys[1], hidden_dimensions, hidden_dimensions)
    p["w_mu"], p["b_mu"] = linear(keys[2], hidden_dimensions, probability_dimensions)
    p["w_sig"], p["b_sig"] = linear(keys[3], hidden_dimensions, probability_dimensions)
    # decoder
    p["w_hid"], p["b_hid"] = linear(keys[4], probability_dimensions, hidden_dimensions)
    p["w_dec2"], p["b_dec2"] = linear(keys[5], hidden_dimensions, hidden_dimensions)
    p["w_out"], p["b_out"] = linear(keys[6], hidden_dimensions, input_channels)
    return p


def reference_forward(x, eps, p):
    """Unfolded pure-JAX f32 reference matching the PyTorch module."""
    h = x @ p["w_lin"] + p["b_lin"]
    h = h @ p["w_lin2"] + p["b_lin2"]
    h = jnp.maximum(h, 0.0)
    mu = h @ p["w_mu"] + p["b_mu"]
    sigma = h @ p["w_sig"] + p["b_sig"]
    z = mu + sigma * eps
    d = z @ p["w_hid"] + p["b_hid"]
    d = d @ p["w_dec2"] + p["b_dec2"]
    d = jnp.maximum(d, 0.0)
    return d @ p["w_out"] + p["b_out"], mu, sigma


if __name__ == "__main__":
    # Small shapes consistent with the module's forward: X is [batch, input_channels]
    B, C, H, P = 8, 32, 64, 16

    key = jax.random.PRNGKey(0)
    k_params, k_x, k_eps = jax.random.split(key, 3)

    params = init_params(k_params, input_channels=C, hidden_dimensions=H,
                         probability_dimensions=P)
    x = jax.random.normal(k_x, (B, C), jnp.float32)
    # eps ~ N(0,1), generated deterministically outside the kernel
    # (mirrors torch.randn_like(sigma))
    eps = jax.random.normal(k_eps, (B, P), jnp.float32)

    w_pack, b_pack = pack_params(params)
    new_x, mu, sigma = jax.block_until_ready(
        vae_forward(x, eps, w_pack, b_pack, C=C, H=H, P=P))

    # Correctness vs. the pure-f32 (unfolded) reference.  The kernel uses bf16
    # matmul operands with f32 accumulation (plus exact offline folding), so the
    # tolerance is loosened to bf16 level.
    ref_x, ref_mu, ref_sigma = reference_forward(x, eps, params)
    assert jnp.allclose(new_x, ref_x, atol=5e-2, rtol=5e-2)
    assert jnp.allclose(mu, ref_mu, atol=5e-2, rtol=5e-2)
    assert jnp.allclose(sigma, ref_sigma, atol=5e-2, rtol=5e-2)

    print("KERNEL_OK")
</pallas_src>

<mosaic_0001>
module attributes {stable_mosaic.version = 11 : i64} {
  func.func @_vae_kernel(%arg0: i32, %arg1: memref<8x32xf32, #tpu.memory_space<vmem>>, %arg2: memref<8x16xf32, #tpu.memory_space<vmem>>, %arg3: memref<176x64xbf16, #tpu.memory_space<vmem>>, %arg4: memref<4x64xf32, #tpu.memory_space<vmem>>, %arg5: memref<8x128xf32, #tpu.memory_space<vmem>>) attributes {dimension_semantics = [#tpu.dimension_semantics<parallel>], iteration_bounds = array<i64: 1>, scalar_prefetch = 0 : i64, scratch_operands = 0 : i64, tpu.core_type = #tpu.core_type<tc>, window_params = [{transform_indices = @transform_0, window_bounds = array<i64: 8, 32>}, {transform_indices = @transform_1, window_bounds = array<i64: 8, 16>}, {pipeline_mode = #tpu.pipeline_mode<synchronous>, transform_indices = @transform_2, window_bounds = array<i64: 176, 64>}, {pipeline_mode = #tpu.pipeline_mode<synchronous>, transform_indices = @transform_3, window_bounds = array<i64: 4, 64>}, {transform_indices = @transform_4, window_bounds = array<i64: 8, 128>}]} {
    %c0 = arith.constant 0 : index
    %c0_0 = arith.constant 0 : index
    %0 = vector.load %arg1[%c0, %c0_0] : memref<8x32xf32, #tpu.memory_space<vmem>>, vector<8x32xf32>
    %1 = arith.truncf %0 : vector<8x32xf32> to vector<8x32xbf16>
    %c0_1 = arith.constant 0 : index
    %c0_2 = arith.constant 0 : index
    %2 = vector.load %arg2[%c0_1, %c0_2] : memref<8x16xf32, #tpu.memory_space<vmem>>, vector<8x16xf32>
    %c0_3 = arith.constant 0 : index
    %c0_4 = arith.constant 0 : index
    %3 = vector.load %arg3[%c0_3, %c0_4] : memref<176x64xbf16, #tpu.memory_space<vmem>>, vector<32x64xbf16>
    %cst = arith.constant dense<0.000000e+00> : vector<8x64xf32>
    %4 = tpu.matmul %1, %3, %cst {dimension_numbers = #tpu.dot_dimension_numbers<[1], [0], [0], [1], [0, 0, 1, 1], [], []>} : vector<8x32xbf16>, vector<32x64xbf16>, vector<8x64xf32> -> vector<8x64xf32>
    %c0_5 = arith.constant 0 : index
    %c0_6 = arith.constant 0 : index
    %5 = vector.load %arg4[%c0_5, %c0_6] : memref<4x64xf32, #tpu.memory_space<vmem>>, vector<1x64xf32>
    %6 = vector.broadcast %5 : vector<1x64xf32> to vector<8x64xf32>
    %7 = arith.addf %4, %6 : vector<8x64xf32>
    %cst_7 = arith.constant 0.000000e+00 : f32
    %8 = vector.broadcast %cst_7 : f32 to vector<8x64xf32>
    %9 = arith.maximumf %7, %8 : vector<8x64xf32>
    %10 = arith.truncf %9 : vector<8x64xf32> to vector<8x64xbf16>
    %c32 = arith.constant 32 : index
    %c0_8 = arith.constant 0 : index
    %11 = vector.load %arg3[%c32, %c0_8] : memref<176x64xbf16, #tpu.memory_space<vmem>>, vector<64x32xbf16>
    %cst_9 = arith.constant dense<0.000000e+00> : vector<8x32xf32>
    %12 = tpu.matmul %10, %11, %cst_9 {dimension_numbers = #tpu.dot_dimension_numbers<[1], [0], [0], [1], [0, 0, 1, 1], [], []>} : vector<8x64xbf16>, vector<64x32xbf16>, vector<8x32xf32> -> vector<8x32xf32>
    %c1 = arith.constant 1 : index
    %c0_10 = arith.constant 0 : index
    %13 = vector.load %arg4[%c1, %c0_10] : memref<4x64xf32, #tpu.memory_space<vmem>>, vector<1x32xf32>
    %14 = vector.broadcast %13 : vector<1x32xf32> to vector<8x32xf32>
    %15 = arith.addf %12, %14 : vector<8x32xf32>
    %c0_11 = arith.constant 0 : index
    %c32_12 = arith.constant 32 : index
    %16 = vector.load %arg5[%c0_11, %c32_12] : memref<8x128xf32, #tpu.memory_space<vmem>>, vector<8x32xf32>
    tpu.vector_store %arg5[%c0_11, %c32_12], %15 {strides = array<i32>} : memref<8x128xf32, #tpu.memory_space<vmem>>, vector<8x32xf32>,
    %17 = vector.extract_strided_slice %15 {offsets = [0, 0], sizes = [8, 16], strides = [1, 1]} : vector<8x32xf32> to vector<8x16xf32>
    %18 = vector.extract_strided_slice %15 {offsets = [0, 16], sizes = [8, 16], strides = [1, 1]} : vector<8x32xf32> to vector<8x16xf32>
    %19 = arith.mulf %18, %2 : vector<8x16xf32>
    %20 = arith.addf %17, %19 : vector<8x16xf32>
    %21 = arith.truncf %20 : vector<8x16xf32> to vector<8x16xbf16>
    %c96 = arith.constant 96 : index
    %c0_13 = arith.constant 0 : index
    %22 = vector.load %arg3[%c96, %c0_13] : memref<176x64xbf16, #tpu.memory_space<vmem>>, vector<16x64xbf16>
    %cst_14 = arith.constant dense<0.000000e+00> : vector<8x64xf32>
    %23 = tpu.matmul %21, %22, %cst_14 {dimension_numbers = #tpu.dot_dimension_numbers<[1], [0], [0], [1], [0, 0, 1, 1], [], []>} : vector<8x16xbf16>, vector<16x64xbf16>, vector<8x64xf32> -> vector<8x64xf32>
    %c2 = arith.constant 2 : index
    %c0_15 = arith.constant 0 : index
    %24 = vector.load %arg4[%c2, %c0_15] : memref<4x64xf32, #tpu.memory_space<vmem>>, vector<1x64xf32>
    %25 = vector.broadcast %24 : vector<1x64xf32> to vector<8x64xf32>
    %26 = arith.addf %23, %25 : vector<8x64xf32>
    %cst_16 = arith.constant 0.000000e+00 : f32
    %27 = vector.broadcast %cst_16 : f32 to vector<8x64xf32>
    %28 = arith.maximumf %26, %27 : vector<8x64xf32>
    %29 = arith.truncf %28 : vector<8x64xf32> to vector<8x64xbf16>
    %c112 = arith.constant 112 : index
    %c0_17 = arith.constant 0 : index
    %30 = vector.load %arg3[%c112, %c0_17] : memref<176x64xbf16, #tpu.memory_space<vmem>>, vector<64x32xbf16>
    %cst_18 = arith.constant dense<0.000000e+00> : vector<8x32xf32>
    %31 = tpu.matmul %29, %30, %cst_18 {dimension_numbers = #tpu.dot_dimension_numbers<[1], [0], [0], [1], [0, 0, 1, 1], [], []>} : vector<8x64xbf16>, vector<64x32xbf16>, vector<8x32xf32> -> vector<8x32xf32>
    %c3 = arith.constant 3 : index
    %c0_19 = arith.constant 0 : index
    %32 = vector.load %arg4[%c3, %c0_19] : memref<4x64xf32, #tpu.memory_space<vmem>>, vector<1x32xf32>
    %33 = vector.broadcast %32 : vector<1x32xf32> to vector<8x32xf32>
    %34 = arith.addf %31, %33 : vector<8x32xf32>
    %c0_20 = arith.constant 0 : index
    %c0_21 = arith.constant 0 : index
    %35 = vector.load %arg5[%c0_20, %c0_21] : memref<8x128xf32, #tpu.memory_space<vmem>>, vector<8x32xf32>
    tpu.vector_store %arg5[%c0_20, %c0_21], %34 {strides = array<i32>} : memref<8x128xf32, #tpu.memory_space<vmem>>, vector<8x32xf32>,
    return
  }
  func.func @transform_0(%arg0: i32) -> (i32, i32) {
    %c0_i32 = arith.constant 0 : i32
    %c0_i32_0 = arith.constant 0 : i32
    return %arg0, %c0_i32 : i32, i32
  }
  func.func @transform_1(%arg0: i32) -> (i32, i32) {
    %c0_i32 = arith.constant 0 : i32
    %c0_i32_0 = arith.constant 0 : i32
    return %arg0, %c0_i32 : i32, i32
  }
  func.func @transform_2(%arg0: i32) -> (i32, i32) {
    %c0_i32 = arith.constant 0 : i32
    %c0_i32_0 = arith.constant 0 : i32
    %c0_i32_1 = arith.constant 0 : i32
    return %c0_i32, %c0_i32_0 : i32, i32
  }
  func.func @transform_3(%arg0: i32) -> (i32, i32) {
    %c0_i32 = arith.constant 0 : i32
    %c0_i32_0 = arith.constant 0 : i32
    %c0_i32_1 = arith.constant 0 : i32
    return %c0_i32, %c0_i32_0 : i32, i32
  }
  func.func @transform_4(%arg0: i32) -> (i32, i32) {
    %c0_i32 = arith.constant 0 : i32
    %c0_i32_0 = arith.constant 0 : i32
    return %arg0, %c0_i32 : i32, i32
  }
}

</mosaic_0001>

<bundles_post_ra>
// kernel: tpu_custom_call.1
= control target key start
LH: loop header
LB: loop body
LE: loop exit
PB: predicated region body
PF: predicated region fallthrough
CT: control target
= control target key end

     0   :  { %v454_v1 = vmov 0.0   ;;  %vm455_vm0 = vmmov 0   ;;  %vm43_vm1 = vcmask 261120   ;;  %s571_s0 = inlined_call_operand.vmem [shape: f32[8,32], index: 0, kind: input, shape index: {}]   ;;  %s572_s1 = inlined_call_operand.vmem [shape: f32[8,16], index: 1, kind: input, shape index: {}]   ;;  %s573_s2 = inlined_call_operand.vmem [shape: bf16[176,64], index: 2, kind: input, shape index: {}]   ;;  %s574_s3 = inlined_call_operand.vmem [shape: f32[4,64], index: 3, kind: input, shape index: {}]   ;;  %s575_s4 = inlined_call_operand.hbm [shape: f32[8,128], index: 4, kind: output, shape index: {}]  }
   0x1   :  { %v419_v0 = vld [vmem:[%s573_s2] sm:$0xff]   ;;  %375 = vmatprep.subr.bf16.mxu1 %v454_v1  ;;  %v420_v2 = vld [vmem:[%s573_s2 + $0x8] sm:$0xff]   ;;  %395 = vmatprep.subr.bf16.mxu0 %v454_v1  ;;  %v421_v4 = vld [vmem:[%s573_s2 + $0x10] sm:$0xff]  }
   0x2   :  { %376 = vmatpush3.bf16.msra.mxu1 %v419_v0  ;;  %379 = vmatprep.mubr.msk.bf16.mxu1 %vm455_vm0, %v454_v1  ;;  %v19_v3 = vld [vmem:[%s571_s0] sm:$0xff] }
   0x3   :  { %377 = vmatprep.subr.bf16.mxu1 %v454_v1  ;;  %397 = vmatprep.mubr.msk.bf16.mxu0 %vm455_vm0, %v454_v1  ;;  %v20_v5 = vpack.c.bf16 %v19_v3, %v19_v3 }
   0x6   :  { %378 = vmatpush3.bf16.msra.mxu1 %v420_v2 }
   0x7   :  { %383 = vmatprep.subr.bf16.mxu1 %v454_v1 }
   0x9   :  { %380 = vmatmul.mubr.msk.bf16.vlgmr.msra.gmra.mrb[0].mxu1 %vm43_vm1, %v20_v5 }
   0xa   :  { %9 = vsyncpa [#allocation3], 0  ;;  %384 = vmatpush3.bf16.msra.mxu1 %v421_v4  ;;  %v422_v6 = vld [vmem:[%s573_s2 + $0x18] sm:$0xff]   ;;  %391 = vmatprep.mubr.msk.bf16.mxu1 %vm455_vm0, %v454_v1  ;;  %v423_v7 = vld [vmem:[%s573_s2 + $0x20] sm:$0xff]   ;;  %s456_s30 = smov 16   ;;  %vm126_vm2 = vcmask 523264  }
   0xb   :  { %385 = vmatprep.subr.bf16.mxu1 %v454_v1  ;;  %v424_v8 = vld [vmem:[%s573_s2 + $0x28] sm:$0xff]   ;;  %v21_v9 = vld [vmem:[%s572_s1] sm:$0xff]  ;;  %v425_v18 = vld [vmem:[%s573_s2 + $0x30] sm:$0xff]   ;;  %s457_s10 = smov 32   ;;  %s458_s11 = smov 112   ;;  %vm174_vm3 = vcmask 523520  }
   0xc   :  { %177 = vrot.lane.b32.xlu0 %v21_v9, %s456_s30  ;;  %v341_v10 = vld [vmem:[%s574_s3] ss:$0 sm:$0xff]  ;;  %396 = vmatpush3.bf16.msra.mxu0 %v425_v18  ;;  %v345_v19 = vld [vmem:[%s574_s3 + $0x1] ss:$0 sm:$0xff]  ;;  %vm200_vm4 = vcmask 130048   ;;  %v426_v30 = vld [vmem:[%s573_s2 + $0x38] sm:$0xff]  }
   0xd   :  { %401 = vmatprep.subr.bf16.mxu0 %v454_v1  ;;  %v427_v32 = vld [vmem:[%s573_s2 + $0x40] sm:$0xff]   ;;  %v428_v33 = vld [vmem:[%s573_s2 + $0x48] sm:$0xff]   ;;  %v429_v34 = vld [vmem:[%s573_s2 + $0x50] sm:$0xff]   ;;  %s459_s0 = smov [#allocation2]  }
   0xe   :  { %386 = vmatpush3.bf16.msra.mxu1 %v422_v6  ;;  %v351_v35 = vld [vmem:[%s574_s3 + $0x2] ss:$0 sm:$0xff]  ;;  %v354_v43 = vld [vmem:[%s574_s3 + $0x3] ss:$0 sm:$0xff]  ;;  %s333_s2 = sshll.u32 %s459_s0, 4  ;;  %s334_s2 = int_to_ptr.vmem [resolvable:$true] %s333_s2 }
   0xf   :  { %387 = vmatprep.subr.bf16.mxu1 %v454_v1  ;;  %s430_s24 = scalar_lea.vmem %s334_s2, 128  ;;  %p435_p1 = scmp.lt.s32.totalorder %s334_s2, %s334_s2 }
  0x10   :  { %p431_p0 = scmp.ne.s32.totalorder %s334_s2, %s430_s24  ;;  %p436_p2 = scmp.lt.s32.totalorder %s430_s24, %s430_s24 }
  0x12   :  { %388 = vmatpush3.bf16.msra.mxu1 %v423_v7  ;;  %p437_p3 = por %p436_p2, %p435_p1 }
  0x13   :  { %389 = vmatprep.subr.bf16.mxu1 %v454_v1 }
  0x14   :  { %p438_p4 = pnand %p437_p3, %p431_p0 }
  0x16   :  { %390 = vmatpush3.bf16.msra.mxu1 %v424_v8 }
  0x7e   :  { %v178_v21 = vpop.permute.xlu0 %177 }
  0xdc   :  { %v81_v11 = vpop.f32.mrb[0].mxu1 }
  0xdd   :  { %v82_v12 = vadd.f32 %v341_v10, %v81_v11  ;;  %v381_v13 = vpop.f32.mrb[1].mxu1 }
  0xde   :  { %v84_v14 = vpop.f32.mrb[2].mxu1 }
  0xdf   :  { %v87_v15 = vmax.f32 %v82_v12, 0.0  ;;  %v382_v16 = vpop.f32.mrb[3].mxu1 }
  0xe1   :  { %v88_v17 = vpack.c.bf16 %v87_v15, %v87_v15 }
  0xe3   :  { %392 = vmatmul.mubr.msk.bf16.vlgmr.msra.gmra.mrb[4].mxu1 %vm126_vm2, %v88_v17 }
 0x1b6   :  { %v164_v20 = vpop.f32.mrb[4].mxu1 }
 0x1b7   :  { %v165_v22 = vadd.f32 %v345_v19, %v164_v20  ;;  %v393_v23 = vpop.f32.mrb[5].mxu1 }
 0x1b8   :  { %v167_v24 = vpop.f32.mrb[6].mxu1 }
 0x1b9   :  { %v180_v25 = vmul.f32 %v178_v21, %v165_v22  ;;  %171 = vrot.lane.b32.xlu1 %v165_v22, %s457_s10  ;;  %v394_v26 = vpop.f32.mrb[7].mxu1 }
 0x1bb   :  { %182 = vrot.lane.b32.xlu0 %v180_v25, %s458_s11 }
 0x22b   :  { %v172_v27 = vpop.permute.xlu1 %171 }
 0x22c   :  { %175 = vst.msk [vmem:[#allocation2] sm:$0xff] %vm174_vm3, %v172_v27 }
 0x22d   :  { %v183_v28 = vpop.permute.xlu0 %182 }
 0x22e   :  { %v185_v29 = vadd.f32 %v183_v28, %v165_v22 }
 0x230   :  { %v186_v31 = vpack.c.bf16 %v185_v29, %v185_v29 }
 0x232   :  { %398 = vmatmul.mubr.msk.bf16.vlgmr.msra.gmra.mrb[0].mxu0 %vm200_vm4, %v186_v31 }
 0x233   :  { %402 = vmatpush3.bf16.msra.mxu0 %v426_v30  ;;  %409 = vmatprep.mubr.msk.bf16.mxu0 %vm455_vm0, %v454_v1 }
 0x234   :  { %403 = vmatprep.subr.bf16.mxu0 %v454_v1 }
 0x237   :  { %404 = vmatpush3.bf16.msra.mxu0 %v427_v32 }
 0x238   :  { %405 = vmatprep.subr.bf16.mxu0 %v454_v1 }
 0x23b   :  { %406 = vmatpush3.bf16.msra.mxu0 %v428_v33 }
 0x23c   :  { %407 = vmatprep.subr.bf16.mxu0 %v454_v1 }
 0x23f   :  { %408 = vmatpush3.bf16.msra.mxu0 %v429_v34 }
 0x305   :  { %v238_v36 = vpop.f32.mrb[0].mxu0 }
 0x306   :  { %v239_v37 = vadd.f32 %v351_v35, %v238_v36  ;;  %v399_v38 = vpop.f32.mrb[1].mxu0 }
 0x307   :  { %v241_v39 = vpop.f32.mrb[2].mxu0 }
 0x308   :  { %v244_v40 = vmax.f32 %v239_v37, 0.0  ;;  %v400_v41 = vpop.f32.mrb[3].mxu0 }
 0x30a   :  { %v245_v42 = vpack.c.bf16 %v244_v40, %v244_v40 }
 0x30c   :  { %410 = vmatmul.mubr.msk.bf16.vlgmr.msra.gmra.mrb[4].mxu0 %vm126_vm2, %v245_v42 }
 0x3df   :  { %v320_v44 = vpop.f32.mrb[4].mxu0 }
 0x3e0   :  { %v321_v45 = vadd.f32 %v354_v43, %v320_v44  ;;  %v411_v46 = vpop.f32.mrb[5].mxu0 }
 0x3e1   :  { %v323_v47 = vpop.f32.mrb[6].mxu0 }
 0x3e2   :  { %326 = vst.msk [vmem:[#allocation2] sm:$0xff] %vm43_vm1, %v321_v45  ;;  %v412_v48 = vpop.f32.mrb[7].mxu0 }
 0x3e3   :  { %441 = shalt.err (!%p438_p4)
}
 0x3e4   :  { %s442_s3 = scalar_lea.hbm %s575_s4, 128 }
 0x3e5   :  { %p443_p5 = scmp.ne.s32.totalorder %s575_s4, %s442_s3  ;;  %p446_p6 = scmp.lt.u32.totalorder %s442_s3, %s575_s4 }
 0x3e7   :  { %p448_p7 = pnand %p446_p6, %p443_p5 }
 0x3e9   :  { %451 = shalt.err (!%p448_p7)
}
 0x3ea   :  { %336 = dma.vmem_to_hbm [thread:$0]  %s334_s2, 128, %s575_s4, [#allocation3]  }
 0x3eb   :  { %452 = dma.done.wait [#allocation3], 128  }
 0x3ec   :  { %453 = vsyncadd [#allocation3], 4294967168 }
 0x3ed   :  { %340 = vsyncpa [#allocation3], 1 }

</bundles_post_ra>
